<compile_context>
chip_gen: v7x
topology: tpu7x:2x2x1
jax: 0.10.0
libtpu: 0.0.40
codegen_flags: <defaults>
</compile_context>

<pallas_src>
import math
import numpy as np
import jax
import jax.numpy as jnp
from jax import lax
from jax.experimental import pallas as pl
from jax.experimental.pallas import tpu as pltpu

DIM = 32
NUM_HEADS = 4
HEAD_DIM = DIM // NUM_HEADS
FF_DIM = 4 * DIM                   # = 128 (exactly one lane tile)
B = 2
T = 8
ROWS = B * T                       # flattened (batch, time) rows       = 16
HROWS = NUM_HEADS * ROWS           # flattened (head, batch, time) rows = 64
QKV_PAD = 128                      # qkv projection padded to one full lane tile
EPS = 1e-5                         # nn.LayerNorm default
NEG_INF = -1e30                    # finite additive mask (exp underflows to 0)
LOG2_T = int(math.log2(T))

assert 3 * DIM <= QKV_PAD and FF_DIM <= 128 and (1 << LOG2_T) == T


def _layer_norm(z, gamma, beta):
    mu = jnp.mean(z, axis=-1, keepdims=True)
    var = jnp.mean((z - mu) * (z - mu), axis=-1, keepdims=True)   # biased, like nn.LayerNorm
    return (z - mu) * lax.rsqrt(var + EPS) * gamma + beta


def decoder_kernel(x_ref, qkv_w_ref, out_w_ref, w1_ref, w2_ref, vec_ref, cs_ref, o_ref):
    x = x_ref[...]                                   # (ROWS, DIM)

    # --- packed bias / LayerNorm slab: one (8,128) tile, static slices ---
    vec = vec_ref[...]
    b1    = vec[0:1, :FF_DIM]
    qkv_b = vec[1:2, :]                              # (1, QKV_PAD), q-part pre-scaled
    out_b = vec[2:3, :DIM]
    b2    = vec[3:4, :DIM]
    ln1_g, ln1_b = vec[4:5, :DIM], vec[5:6, :DIM]
    ln2_g, ln2_b = vec[6:7, :DIM], vec[7:8, :DIM]

    # --- fused QKV projection (softmax scale folded into the Q columns) ---
    qkv = jnp.dot(x, qkv_w_ref[...], preferred_element_type=jnp.float32) + qkv_b  # (ROWS, QKV_PAD)

    # --- RoPE (interleaved-pair convention) on all q/k lanes at once; v passes through.
    #   out[2i]   = in[2i]*cos_i - in[2i+1]*sin_i
    #   out[2i+1] = in[2i]*sin_i + in[2i+1]*cos_i
    # Pair swap via XLU lane rotations + parity select (pltpu.roll == jnp.roll semantics;
    # QKV_PAD-1 is the positive-shift equivalent of shift=-1).  The +-1 sign is folded
    # into the sin table; v/pad lanes have cos=1/0, sin=0.
    cs = cs_ref[...]                                  # (2*ROWS, QKV_PAD)
    cos = cs[:ROWS, :]
    sin = cs[ROWS:, :]                                # sign-folded per lane parity
    lane = lax.broadcasted_iota(jnp.int32, (ROWS, QKV_PAD), 1)
    swapped = jnp.where((lane & 1) == 0,
                        pltpu.roll(qkv, shift=QKV_PAD - 1, axis=1),  # even lane j <- in[j+1]
                        pltpu.roll(qkv, shift=1, axis=1))            # odd  lane j <- in[j-1]
    roped = qkv * cos + swapped * sin                # (ROWS, QKV_PAD)

    # --- single lane->sublane head restack: (ROWS, 3*DIM) -> (HROWS, 3*HEAD_DIM) ---
    # Row order r = h*ROWS + b*T + t; lanes = [q_h | k_h | v_h].
    qkvh = jnp.concatenate(
        [jnp.concatenate(
            [roped[:, comp * DIM + h * HEAD_DIM: comp * DIM + (h + 1) * HEAD_DIM]
             for comp in range(3)], axis=1)
         for h in range(NUM_HEADS)], axis=0)          # (HROWS, 3*HEAD_DIM)
    qh = qkvh[:, :HEAD_DIM]
    kh = qkvh[:, HEAD_DIM:2 * HEAD_DIM]
    vh = qkvh[:, 2 * HEAD_DIM:]

    # --- all heads & batches in one QK^T dot; mask generated in-kernel (no DMA) ---
    scores = lax.dot_general(qh, kh, (((1,), (1,)), ((), ())),
                             preferred_element_type=jnp.float32)     # (HROWS, HROWS)
    r = lax.broadcasted_iota(jnp.int32, (HROWS, HROWS), 0)
    c = lax.broadcasted_iota(jnp.int32, (HROWS, HROWS), 1)
    same_block = jnp.right_shift(r, LOG2_T) == jnp.right_shift(c, LOG2_T)
    ok = same_block & (c <= r)                        # per-(head,batch) causal block
    scores = jnp.where(ok, scores, NEG_INF)
    m = jnp.max(scores, axis=-1, keepdims=True)
    e = jnp.exp(scores - m)
    w = e / jnp.sum(e, axis=-1, keepdims=True)        # exact divide (reference parity)
    attn_h = jnp.dot(w, vh, preferred_element_type=jnp.float32)      # (HROWS, HEAD_DIM)

    # --- single head re-merge + ONE out-projection dot ---
    attn = jnp.concatenate(
        [attn_h[h * ROWS:(h + 1) * ROWS, :] for h in range(NUM_HEADS)], axis=1)  # (ROWS, DIM)
    attn_proj = jnp.dot(attn, out_w_ref[...], preferred_element_type=jnp.float32) + out_b

    # TODO(synk): nn.Dropout is stochastic; implemented as identity (eval mode).
    x1 = _layer_norm(x + attn_proj, ln1_g, ln1_b)

    # --- FFN + residual + LN2 ---
    h1 = jnp.maximum(
        jnp.dot(x1, w1_ref[...], preferred_element_type=jnp.float32) + b1, 0.0)
    ff = jnp.dot(h1, w2_ref[...], preferred_element_type=jnp.float32) + b2
    o_ref[...] = _layer_norm(x1 + ff, ln2_g, ln2_b)


def make_params(key):
    """Module parameters in x @ W + b convention (equivalent to torch Linear)."""
    ks = jax.random.split(key, 8)

    def lin_w(k, fan_in, fan_out):
        return jax.random.normal(k, (fan_in, fan_out), jnp.float32) / math.sqrt(fan_in)

    qkv_w = lin_w(ks[0], DIM, 3 * DIM)
    qkv_b = jax.random.normal(ks[1], (1, 3 * DIM), jnp.float32) * 0.02
    out_w = lin_w(ks[2], DIM, DIM)
    out_b = jax.random.normal(ks[3], (1, DIM), jnp.float32) * 0.02
    w1 = lin_w(ks[4], DIM, FF_DIM)
    b1 = jax.random.normal(ks[5], (1, FF_DIM), jnp.float32) * 0.02
    w2 = lin_w(ks[6], FF_DIM, DIM)
    b2 = jax.random.normal(ks[7], (1, DIM), jnp.float32) * 0.02
    ln1_g = jnp.ones((1, DIM), jnp.float32); ln1_b = jnp.zeros((1, DIM), jnp.float32)
    ln2_g = jnp.ones((1, DIM), jnp.float32); ln2_b = jnp.zeros((1, DIM), jnp.float32)
    return (qkv_w, qkv_b, out_w, out_b, w1, b1, w2, b2, ln1_g, ln1_b, ln2_g, ln2_b)


def _rope_tables():
    """(2*ROWS, QKV_PAD) table: rows [0:ROWS] = cos, rows [ROWS:] = sign-folded sin.
    q/k lanes carry per-(t, pair) values; v and pad lanes are identity (cos=1/0, sin=0)."""
    half = HEAD_DIM // 2
    inv_freq = 1.0 / (10000.0 ** (np.arange(half, dtype=np.float64) / half))
    ang = np.arange(T, dtype=np.float64)[:, None] * inv_freq[None, :]    # (T, half)
    cos_h = np.repeat(np.cos(ang), 2, axis=1)                            # (T, HEAD_DIM)
    sin_h = np.repeat(np.sin(ang), 2, axis=1)
    sign = np.tile(np.array([-1.0, 1.0]), half)                          # -sin even, +sin odd
    sin_h = sin_h * sign
    cos_qk = np.tile(cos_h, (1, NUM_HEADS))                              # (T, DIM)
    sin_qk = np.tile(sin_h, (1, NUM_HEADS))
    cos_row = np.zeros((T, QKV_PAD)); sin_row = np.zeros((T, QKV_PAD))
    cos_row[:, :DIM] = cos_qk; cos_row[:, DIM:2 * DIM] = cos_qk
    cos_row[:, 2 * DIM:3 * DIM] = 1.0                                    # v passes through
    sin_row[:, :DIM] = sin_qk; sin_row[:, DIM:2 * DIM] = sin_qk
    cos_full = np.tile(cos_row, (B, 1))                                  # (ROWS, QKV_PAD)
    sin_full = np.tile(sin_row, (B, 1))
    return np.concatenate([cos_full, sin_full], axis=0).astype(np.float32)


def prepare_layer(params):
    """One-time host prep: fold softmax scale, pack biases/LN into one tile, build RoPE tables."""
    (qkv_w, qkv_b, out_w, out_b, w1, b1, w2, b2,
     ln1_g, ln1_b, ln2_g, ln2_b) = [np.asarray(p, np.float32) for p in params]
    scale = 1.0 / math.sqrt(HEAD_DIM)
    qkv_w_s = qkv_w.copy(); qkv_w_s[:, :DIM] *= scale        # fold 1/sqrt(hd) into Q proj
    qkv_b_s = qkv_b.copy(); qkv_b_s[:, :DIM] *= scale
    qkv_w_pad = np.zeros((DIM, QKV_PAD), np.float32)
    qkv_w_pad[:, :3 * DIM] = qkv_w_s
    vec = np.zeros((8, 128), np.float32)                     # one (8,128) tile -> one DMA
    vec[0, :FF_DIM] = b1[0]
    vec[1, :3 * DIM] = qkv_b_s[0]
    vec[2, :DIM] = out_b[0]
    vec[3, :DIM] = b2[0]
    vec[4, :DIM] = ln1_g[0]; vec[5, :DIM] = ln1_b[0]
    vec[6, :DIM] = ln2_g[0]; vec[7, :DIM] = ln2_b[0]
    return (jnp.asarray(qkv_w_pad), jnp.asarray(out_w), jnp.asarray(w1), jnp.asarray(w2),
            jnp.asarray(vec), jnp.asarray(_rope_tables()))


@jax.jit
def toy_rope_decoder_layer(x, prepared):
    qkv_w, out_w, w1, w2, vec, cs = prepared
    x2d = x.reshape(ROWS, DIM)
    out2d = pl.pallas_call(                   # single invocation, no grid: whole problem
        decoder_kernel,                       # (<0.2 MiB) resident in VMEM at once
        out_shape=jax.ShapeDtypeStruct((ROWS, DIM), jnp.float32),
    )(x2d, qkv_w, out_w, w1, w2, vec, cs)
    return out2d.reshape(B, T, DIM)


def reference_forward(x, params):
    """float64 numpy reference mirroring the PyTorch module (eval mode)."""
    (qkv_w, qkv_b, out_w, out_b, w1, b1, w2, b2,
     ln1_g, ln1_b, ln2_g, ln2_b) = [np.asarray(p, np.float64) for p in params]
    x = np.asarray(x, np.float64)                            # (B, T, DIM)
    qkv = x @ qkv_w + qkv_b[0]

    def heads(z):                                            # (B,T,DIM) -> (B,H,T,HD)
        return z.reshape(B, T, NUM_HEADS, HEAD_DIM).transpose(0, 2, 1, 3)

    q, k, v = heads(qkv[..., :DIM]), heads(qkv[..., DIM:2 * DIM]), heads(qkv[..., 2 * DIM:])
    half = HEAD_DIM // 2
    inv_freq = 1.0 / (10000.0 ** (np.arange(half) / half))
    ang = np.arange(T)[:, None] * inv_freq[None, :]
    cos, sin = np.cos(ang), np.sin(ang)                      # (T, half)

    def rope(z):                                             # interleaved-pair convention
        z1, z2 = z[..., 0::2], z[..., 1::2]
        out = np.empty_like(z)
        out[..., 0::2] = z1 * cos - z2 * sin
        out[..., 1::2] = z1 * sin + z2 * cos
        return out

    q, k = rope(q), rope(k)
    scores = q @ k.transpose(0, 1, 3, 2) / math.sqrt(HEAD_DIM)
    causal = np.triu(np.ones((T, T), bool), 1)
    scores = np.where(causal, -np.inf, scores)
    scores = scores - scores.max(-1, keepdims=True)
    e = np.exp(scores)
    attn = (e / e.sum(-1, keepdims=True)) @ v                # (B,H,T,HD)
    attn = attn.transpose(0, 2, 1, 3).reshape(B, T, DIM)

    def ln(z, g, b):
        mu = z.mean(-1, keepdims=True)
        var = ((z - mu) ** 2).mean(-1, keepdims=True)
        return (z - mu) / np.sqrt(var + EPS) * g[0] + b[0]

    x1 = ln(x + attn @ out_w + out_b[0], ln1_g, ln1_b)
    ff = np.maximum(x1 @ w1 + b1[0], 0.0) @ w2 + b2[0]
    return ln(x1 + ff, ln2_g, ln2_b)


if __name__ == "__main__":
    key = jax.random.PRNGKey(0)
    kx, kp = jax.random.split(key)
    x = jax.random.normal(kx, (B, T, DIM), jnp.float32)
    params = make_params(kp)
    prepared = prepare_layer(params)          # built once; reused across jit'ed calls
    out = jax.block_until_ready(toy_rope_decoder_layer(x, prepared))

    assert out.shape == (B, T, DIM) and out.dtype == jnp.float32
    assert bool(jnp.all(jnp.isfinite(out)))
    ref = reference_forward(x, params)
    max_err = float(np.max(np.abs(np.asarray(out, np.float64) - ref)))
    # Loose bound: tolerant of MXU reduced-precision f32 passes at default matmul
    # precision, but catches any layout / mask / RoPE-convention bug (O(0.1+) diffs).
    assert max_err < 2e-2, f"kernel/reference mismatch: max|diff|={max_err}"
    print("KERNEL_OK")
</pallas_src>

<mosaic_0001>
module attributes {stable_mosaic.version = 11 : i64} {
  func.func @decoder_kernel(%arg0: memref<16x32xf32, #tpu.memory_space<vmem>>, %arg1: memref<32x128xf32, #tpu.memory_space<vmem>>, %arg2: memref<32x32xf32, #tpu.memory_space<vmem>>, %arg3: memref<32x128xf32, #tpu.memory_space<vmem>>, %arg4: memref<128x32xf32, #tpu.memory_space<vmem>>, %arg5: memref<8x128xf32, #tpu.memory_space<vmem>>, %arg6: memref<32x128xf32, #tpu.memory_space<vmem>>, %arg7: memref<16x32xf32, #tpu.memory_space<vmem>>) attributes {dimension_semantics = [], scalar_prefetch = 0 : i64, scratch_operands = 0 : i64, tpu.core_type = #tpu.core_type<tc>} {
    %c0 = arith.constant 0 : index
    %c0_0 = arith.constant 0 : index
    %0 = vector.load %arg0[%c0, %c0_0] : memref<16x32xf32, #tpu.memory_space<vmem>>, vector<16x32xf32>
    %c0_1 = arith.constant 0 : index
    %c0_2 = arith.constant 0 : index
    %1 = vector.load %arg5[%c0_1, %c0_2] : memref<8x128xf32, #tpu.memory_space<vmem>>, vector<8x128xf32>
    %2 = vector.extract_strided_slice %1 {offsets = [0, 0], sizes = [1, 128], strides = [1, 1]} : vector<8x128xf32> to vector<1x128xf32>
    %3 = vector.extract_strided_slice %1 {offsets = [1, 0], sizes = [1, 128], strides = [1, 1]} : vector<8x128xf32> to vector<1x128xf32>
    %4 = vector.extract_strided_slice %1 {offsets = [2, 0], sizes = [1, 32], strides = [1, 1]} : vector<8x128xf32> to vector<1x32xf32>
    %5 = vector.extract_strided_slice %1 {offsets = [3, 0], sizes = [1, 32], strides = [1, 1]} : vector<8x128xf32> to vector<1x32xf32>
    %6 = vector.extract_strided_slice %1 {offsets = [4, 0], sizes = [1, 32], strides = [1, 1]} : vector<8x128xf32> to vector<1x32xf32>
    %7 = vector.extract_strided_slice %1 {offsets = [5, 0], sizes = [1, 32], strides = [1, 1]} : vector<8x128xf32> to vector<1x32xf32>
    %8 = vector.extract_strided_slice %1 {offsets = [6, 0], sizes = [1, 32], strides = [1, 1]} : vector<8x128xf32> to vector<1x32xf32>
    %9 = vector.extract_strided_slice %1 {offsets = [7, 0], sizes = [1, 32], strides = [1, 1]} : vector<8x128xf32> to vector<1x32xf32>
    %c0_3 = arith.constant 0 : index
    %c0_4 = arith.constant 0 : index
    %10 = vector.load %arg1[%c0_3, %c0_4] : memref<32x128xf32, #tpu.memory_space<vmem>>, vector<32x128xf32>
    %cst = arith.constant dense<0.000000e+00> : vector<16x128xf32>
    %11 = tpu.matmul %0, %10, %cst {dimension_numbers = #tpu.dot_dimension_numbers<[1], [0], [0], [1], [0, 0, 1, 1], [], []>} : vector<16x32xf32>, vector<32x128xf32>, vector<16x128xf32> -> vector<16x128xf32>
    %12 = vector.broadcast %3 : vector<1x128xf32> to vector<16x128xf32>
    %13 = arith.addf %11, %12 : vector<16x128xf32>
    %c0_5 = arith.constant 0 : index
    %c0_6 = arith.constant 0 : index
    %14 = vector.load %arg6[%c0_5, %c0_6] : memref<32x128xf32, #tpu.memory_space<vmem>>, vector<32x128xf32>
    %15 = vector.extract_strided_slice %14 {offsets = [0, 0], sizes = [16, 128], strides = [1, 1]} : vector<32x128xf32> to vector<16x128xf32>
    %16 = vector.extract_strided_slice %14 {offsets = [16, 0], sizes = [16, 128], strides = [1, 1]} : vector<32x128xf32> to vector<16x128xf32>
    %17 = tpu.iota {dimensions = array<i32: 1>} : vector<16x128xi32>
    %c1_i32 = arith.constant 1 : i32
    %18 = vector.broadcast %c1_i32 : i32 to vector<16x128xi32>
    %19 = arith.andi %17, %18 : vector<16x128xi32>
    %c0_i32 = arith.constant 0 : i32
    %20 = vector.broadcast %c0_i32 : i32 to vector<16x128xi32>
    %21 = arith.cmpi eq, %19, %20 : vector<16x128xi32>
    %c127_i32 = arith.constant 127 : i32
    %22 = tpu.dynamic_rotate %13 by %c127_i32 dim 1 : vector<16x128xf32>, i32 -> vector<16x128xf32>
    %c1_i32_7 = arith.constant 1 : i32
    %23 = tpu.dynamic_rotate %13 by %c1_i32_7 dim 1 : vector<16x128xf32>, i32 -> vector<16x128xf32>
    %24 = arith.select %21, %22, %23 : vector<16x128xi1>, vector<16x128xf32>
    %25 = arith.mulf %13, %15 : vector<16x128xf32>
    %26 = arith.mulf %24, %16 : vector<16x128xf32>
    %27 = arith.addf %25, %26 : vector<16x128xf32>
    %28 = vector.extract_strided_slice %27 {offsets = [0, 0], sizes = [16, 8], strides = [1, 1]} : vector<16x128xf32> to vector<16x8xf32>
    %29 = vector.extract_strided_slice %27 {offsets = [0, 32], sizes = [16, 8], strides = [1, 1]} : vector<16x128xf32> to vector<16x8xf32>
    %30 = vector.extract_strided_slice %27 {offsets = [0, 64], sizes = [16, 8], strides = [1, 1]} : vector<16x128xf32> to vector<16x8xf32>
    %31 = tpu.concatenate %28, %29, %30 in 1 : vector<16x8xf32>, vector<16x8xf32>, vector<16x8xf32> -> vector<16x24xf32>
    %32 = vector.extract_strided_slice %27 {offsets = [0, 8], sizes = [16, 8], strides = [1, 1]} : vector<16x128xf32> to vector<16x8xf32>
    %33 = vector.extract_strided_slice %27 {offsets = [0, 40], sizes = [16, 8], strides = [1, 1]} : vector<16x128xf32> to vector<16x8xf32>
    %34 = vector.extract_strided_slice %27 {offsets = [0, 72], sizes = [16, 8], strides = [1, 1]} : vector<16x128xf32> to vector<16x8xf32>
    %35 = tpu.concatenate %32, %33, %34 in 1 : vector<16x8xf32>, vector<16x8xf32>, vector<16x8xf32> -> vector<16x24xf32>
    %36 = vector.extract_strided_slice %27 {offsets = [0, 16], sizes = [16, 8], strides = [1, 1]} : vector<16x128xf32> to vector<16x8xf32>
    %37 = vector.extract_strided_slice %27 {offsets = [0, 48], sizes = [16, 8], strides = [1, 1]} : vector<16x128xf32> to vector<16x8xf32>
    %38 = vector.extract_strided_slice %27 {offsets = [0, 80], sizes = [16, 8], strides = [1, 1]} : vector<16x128xf32> to vector<16x8xf32>
    %39 = tpu.concatenate %36, %37, %38 in 1 : vector<16x8xf32>, vector<16x8xf32>, vector<16x8xf32> -> vector<16x24xf32>
    %40 = vector.extract_strided_slice %27 {offsets = [0, 24], sizes = [16, 8], strides = [1, 1]} : vector<16x128xf32> to vector<16x8xf32>
    %41 = vector.extract_strided_slice %27 {offsets = [0, 56], sizes = [16, 8], strides = [1, 1]} : vector<16x128xf32> to vector<16x8xf32>
    %42 = vector.extract_strided_slice %27 {offsets = [0, 88], sizes = [16, 8], strides = [1, 1]} : vector<16x128xf32> to vector<16x8xf32>
    %43 = tpu.concatenate %40, %41, %42 in 1 : vector<16x8xf32>, vector<16x8xf32>, vector<16x8xf32> -> vector<16x24xf32>
    %44 = tpu.concatenate %31, %35, %39, %43 in 0 : vector<16x24xf32>, vector<16x24xf32>, vector<16x24xf32>, vector<16x24xf32> -> vector<64x24xf32>
    %45 = vector.extract_strided_slice %44 {offsets = [0, 0], sizes = [64, 8], strides = [1, 1]} : vector<64x24xf32> to vector<64x8xf32>
    %46 = vector.extract_strided_slice %44 {offsets = [0, 8], sizes = [64, 8], strides = [1, 1]} : vector<64x24xf32> to vector<64x8xf32>
    %47 = vector.extract_strided_slice %44 {offsets = [0, 16], sizes = [64, 8], strides = [1, 1]} : vector<64x24xf32> to vector<64x8xf32>
    %cst_8 = arith.constant dense<0.000000e+00> : vector<64x64xf32>
    %48 = tpu.matmul %45, %46, %cst_8 {dimension_numbers = #tpu.dot_dimension_numbers<[1], [1], [0], [0], [0, 0, 1, 0], [], []>} : vector<64x8xf32>, vector<64x8xf32>, vector<64x64xf32> -> vector<64x64xf32>
    %49 = tpu.iota {dimensions = array<i32: 0>} : vector<64x64xi32>
    %50 = tpu.iota {dimensions = array<i32: 1>} : vector<64x64xi32>
    %c3_i32 = arith.constant 3 : i32
    %51 = vector.broadcast %c3_i32 : i32 to vector<64x64xi32>
    %52 = arith.shrsi %49, %51 : vector<64x64xi32>
    %c3_i32_9 = arith.constant 3 : i32
    %53 = vector.broadcast %c3_i32_9 : i32 to vector<64x64xi32>
    %54 = arith.shrsi %50, %53 : vector<64x64xi32>
    %55 = arith.cmpi eq, %52, %54 : vector<64x64xi32>
    %56 = arith.cmpi sle, %50, %49 : vector<64x64xi32>
    %57 = arith.andi %55, %56 : vector<64x64xi1>
    %cst_10 = arith.constant -1.000000e+30 : f32
    %58 = vector.broadcast %cst_10 : f32 to vector<64x64xf32>
    %59 = arith.select %57, %48, %58 : vector<64x64xi1>, vector<64x64xf32>
    %cst_11 = arith.constant dense<0xFF800000> : vector<64xf32>
    %60 = vector.multi_reduction <maximumf>, %59, %cst_11 [1] : vector<64x64xf32> to vector<64xf32>
    %61 = vector.shape_cast %60 : vector<64xf32> to vector<64x1xf32>
    %62 = vector.broadcast %61 : vector<64x1xf32> to vector<64x64xf32>
    %63 = arith.subf %59, %62 : vector<64x64xf32>
    %64 = math.exp %63 : vector<64x64xf32>
    %cst_12 = arith.constant dense<0.000000e+00> : vector<64xf32>
    %65 = vector.multi_reduction <add>, %64, %cst_12 [1] : vector<64x64xf32> to vector<64xf32>
    %66 = vector.shape_cast %65 : vector<64xf32> to vector<64x1xf32>
    %67 = vector.broadcast %66 : vector<64x1xf32> to vector<64x64xf32>
    %68 = arith.divf %64, %67 : vector<64x64xf32>
    %cst_13 = arith.constant dense<0.000000e+00> : vector<64x8xf32>
    %69 = tpu.matmul %68, %47, %cst_13 {dimension_numbers = #tpu.dot_dimension_numbers<[1], [0], [0], [1], [0, 0, 1, 1], [], []>} : vector<64x64xf32>, vector<64x8xf32>, vector<64x8xf32> -> vector<64x8xf32>
    %70 = vector.extract_strided_slice %69 {offsets = [0, 0], sizes = [16, 8], strides = [1, 1]} : vector<64x8xf32> to vector<16x8xf32>
    %71 = vector.extract_strided_slice %69 {offsets = [16, 0], sizes = [16, 8], strides = [1, 1]} : vector<64x8xf32> to vector<16x8xf32>
    %72 = vector.extract_strided_slice %69 {offsets = [32, 0], sizes = [16, 8], strides = [1, 1]} : vector<64x8xf32> to vector<16x8xf32>
    %73 = vector.extract_strided_slice %69 {offsets = [48, 0], sizes = [16, 8], strides = [1, 1]} : vector<64x8xf32> to vector<16x8xf32>
    %74 = tpu.concatenate %70, %71, %72, %73 in 1 : vector<16x8xf32>, vector<16x8xf32>, vector<16x8xf32>, vector<16x8xf32> -> vector<16x32xf32>
    %c0_14 = arith.constant 0 : index
    %c0_15 = arith.constant 0 : index
    %75 = vector.load %arg2[%c0_14, %c0_15] : memref<32x32xf32, #tpu.memory_space<vmem>>, vector<32x32xf32>
    %cst_16 = arith.constant dense<0.000000e+00> : vector<16x32xf32>
    %76 = tpu.matmul %74, %75, %cst_16 {dimension_numbers = #tpu.dot_dimension_numbers<[1], [0], [0], [1], [0, 0, 1, 1], [], []>} : vector<16x32xf32>, vector<32x32xf32>, vector<16x32xf32> -> vector<16x32xf32>
    %77 = vector.broadcast %4 : vector<1x32xf32> to vector<16x32xf32>
    %78 = arith.addf %76, %77 : vector<16x32xf32>
    %79 = arith.addf %0, %78 : vector<16x32xf32>
    %cst_17 = arith.constant dense<0.000000e+00> : vector<16xf32>
    %80 = vector.multi_reduction <add>, %79, %cst_17 [1] : vector<16x32xf32> to vector<16xf32>
    %81 = vector.shape_cast %80 : vector<16xf32> to vector<16x1xf32>
    %cst_18 = arith.constant 3.200000e+01 : f32
    %82 = vector.broadcast %cst_18 : f32 to vector<16x1xf32>
    %83 = arith.divf %81, %82 : vector<16x1xf32>
    %84 = vector.broadcast %83 : vector<16x1xf32> to vector<16x32xf32>
    %85 = arith.subf %79, %84 : vector<16x32xf32>
    %86 = vector.broadcast %83 : vector<16x1xf32> to vector<16x32xf32>
    %87 = arith.subf %79, %86 : vector<16x32xf32>
    %88 = arith.mulf %85, %87 : vector<16x32xf32>
    %cst_19 = arith.constant dense<0.000000e+00> : vector<16xf32>
    %89 = vector.multi_reduction <add>, %88, %cst_19 [1] : vector<16x32xf32> to vector<16xf32>
    %90 = vector.shape_cast %89 : vector<16xf32> to vector<16x1xf32>
    %cst_20 = arith.constant 3.200000e+01 : f32
    %91 = vector.broadcast %cst_20 : f32 to vector<16x1xf32>
    %92 = arith.divf %90, %91 : vector<16x1xf32>
    %93 = vector.broadcast %83 : vector<16x1xf32> to vector<16x32xf32>
    %94 = arith.subf %79, %93 : vector<16x32xf32>
    %cst_21 = arith.constant 9.99999974E-6 : f32
    %95 = vector.broadcast %cst_21 : f32 to vector<16x1xf32>
    %96 = arith.addf %92, %95 : vector<16x1xf32>
    %97 = math.rsqrt %96 : vector<16x1xf32>
    %98 = vector.broadcast %97 : vector<16x1xf32> to vector<16x32xf32>
    %99 = arith.mulf %94, %98 : vector<16x32xf32>
    %100 = vector.broadcast %6 : vector<1x32xf32> to vector<16x32xf32>
    %101 = arith.mulf %99, %100 : vector<16x32xf32>
    %102 = vector.broadcast %7 : vector<1x32xf32> to vector<16x32xf32>
    %103 = arith.addf %101, %102 : vector<16x32xf32>
    %c0_22 = arith.constant 0 : index
    %c0_23 = arith.constant 0 : index
    %104 = vector.load %arg3[%c0_22, %c0_23] : memref<32x128xf32, #tpu.memory_space<vmem>>, vector<32x128xf32>
    %cst_24 = arith.constant dense<0.000000e+00> : vector<16x128xf32>
    %105 = tpu.matmul %103, %104, %cst_24 {dimension_numbers = #tpu.dot_dimension_numbers<[1], [0], [0], [1], [0, 0, 1, 1], [], []>} : vector<16x32xf32>, vector<32x128xf32>, vector<16x128xf32> -> vector<16x128xf32>
    %106 = vector.broadcast %2 : vector<1x128xf32> to vector<16x128xf32>
    %107 = arith.addf %105, %106 : vector<16x128xf32>
    %cst_25 = arith.constant 0.000000e+00 : f32
    %108 = vector.broadcast %cst_25 : f32 to vector<16x128xf32>
    %109 = arith.maximumf %107, %108 : vector<16x128xf32>
    %c0_26 = arith.constant 0 : index
    %c0_27 = arith.constant 0 : index
    %110 = vector.load %arg4[%c0_26, %c0_27] : memref<128x32xf32, #tpu.memory_space<vmem>>, vector<128x32xf32>
    %cst_28 = arith.constant dense<0.000000e+00> : vector<16x32xf32>
    %111 = tpu.matmul %109, %110, %cst_28 {dimension_numbers = #tpu.dot_dimension_numbers<[1], [0], [0], [1], [0, 0, 1, 1], [], []>} : vector<16x128xf32>, vector<128x32xf32>, vector<16x32xf32> -> vector<16x32xf32>
    %112 = vector.broadcast %5 : vector<1x32xf32> to vector<16x32xf32>
    %113 = arith.addf %111, %112 : vector<16x32xf32>
    %114 = arith.addf %103, %113 : vector<16x32xf32>
    %cst_29 = arith.constant dense<0.000000e+00> : vector<16xf32>
    %115 = vector.multi_reduction <add>, %114, %cst_29 [1] : vector<16x32xf32> to vector<16xf32>
    %116 = vector.shape_cast %115 : vector<16xf32> to vector<16x1xf32>
    %cst_30 = arith.constant 3.200000e+01 : f32
    %117 = vector.broadcast %cst_30 : f32 to vector<16x1xf32>
    %118 = arith.divf %116, %117 : vector<16x1xf32>
    %119 = vector.broadcast %118 : vector<16x1xf32> to vector<16x32xf32>
    %120 = arith.subf %114, %119 : vector<16x32xf32>
    %121 = vector.broadcast %118 : vector<16x1xf32> to vector<16x32xf32>
    %122 = arith.subf %114, %121 : vector<16x32xf32>
    %123 = arith.mulf %120, %122 : vector<16x32xf32>
    %cst_31 = arith.constant dense<0.000000e+00> : vector<16xf32>
    %124 = vector.multi_reduction <add>, %123, %cst_31 [1] : vector<16x32xf32> to vector<16xf32>
    %125 = vector.shape_cast %124 : vector<16xf32> to vector<16x1xf32>
    %cst_32 = arith.constant 3.200000e+01 : f32
    %126 = vector.broadcast %cst_32 : f32 to vector<16x1xf32>
    %127 = arith.divf %125, %126 : vector<16x1xf32>
    %128 = vector.broadcast %118 : vector<16x1xf32> to vector<16x32xf32>
    %129 = arith.subf %114, %128 : vector<16x32xf32>
    %cst_33 = arith.constant 9.99999974E-6 : f32
    %130 = vector.broadcast %cst_33 : f32 to vector<16x1xf32>
    %131 = arith.addf %127, %130 : vector<16x1xf32>
    %132 = math.rsqrt %131 : vector<16x1xf32>
    %133 = vector.broadcast %132 : vector<16x1xf32> to vector<16x32xf32>
    %134 = arith.mulf %129, %133 : vector<16x32xf32>
    %135 = vector.broadcast %8 : vector<1x32xf32> to vector<16x32xf32>
    %136 = arith.mulf %134, %135 : vector<16x32xf32>
    %137 = vector.broadcast %9 : vector<1x32xf32> to vector<16x32xf32>
    %138 = arith.addf %136, %137 : vector<16x32xf32>
    %c0_34 = arith.constant 0 : index
    %c0_35 = arith.constant 0 : index
    %139 = vector.load %arg7[%c0_34, %c0_35] : memref<16x32xf32, #tpu.memory_space<vmem>>, vector<16x32xf32>
    tpu.vector_store %arg7[%c0_34, %c0_35], %138 {strides = array<i32>} : memref<16x32xf32, #tpu.memory_space<vmem>>, vector<16x32xf32>,
    return
  }
}

</mosaic_0001>

<bundles_post_ra>
// kernel: toy_rope_decoder_layer.1
= control target key start
LH: loop header
LB: loop body
LE: loop exit
PB: predicated region body
PF: predicated region fallthrough
CT: control target
= control target key end

     0   :  { %vm1901_vm0 = vcmask 261120   ;;  %s1893_s0 = inlined_call_operand.vmem [shape: f32[16,32], index: 0, kind: input, shape index: {}]   ;;  %s1894_s1 = inlined_call_operand.vmem [shape: f32[32,128], index: 1, kind: input, shape index: {}]   ;;  %s1895_s2 = inlined_call_operand.vmem [shape: f32[32,32], index: 2, kind: input, shape index: {}]   ;;  %s1896_s3 = inlined_call_operand.vmem [shape: f32[32,128], index: 3, kind: input, shape index: {}]   ;;  %s1897_s4 = inlined_call_operand.vmem [shape: f32[128,32], index: 4, kind: input, shape index: {}]   ;;  %s1898_s5 = inlined_call_operand.vmem [shape: f32[8,128], index: 5, kind: input, shape index: {}]   ;;  %s1899_s6 = inlined_call_operand.vmem [shape: f32[32,128], index: 6, kind: input, shape index: {}]   ;;  %s1900_s7 = inlined_call_operand.hbm [shape: f32[16,32], index: 7, kind: output, shape index: {}]  }
   0x1   :  { %v30_v0 = vld [vmem:[%s1894_s1] sm:$0xff]  ;;  %v31_v1 = vld [vmem:[%s1894_s1 + $0x8] sm:$0xff]  ;;  %v32_v2 = vld [vmem:[%s1894_s1 + $0x10] sm:$0xff] }
   0x2   :  { %v1298_v3 = vpack.c.bf16 %v31_v1, %v30_v0  ;;  %v33_v4 = vld [vmem:[%s1894_s1 + $0x18] sm:$0xff]  ;;  %v1586_v5 = vld [vmem:[%s1893_s0] sm:$0xff] }
   0x3   :  { %v1302_v6 = vpack.c.bf16 %v33_v4, %v32_v2  ;;  %1182 = vmatprep.mubr.msk.f32.mxu0 %vm1901_vm0, %v1586_v5 }
   0x4   :  { %12 = vsyncpa [#allocation3], 0  ;;  %1299 = vmatprep.subr.bf16.mxu0 %v1298_v3  ;;  %v1593_v7 = vld [vmem:[%s1893_s0 + $0x8] sm:$0xff]  ;;  %v34_v8 = vlaneseq  ;;  %v1603_v11 = vld [vmem:[%s1898_s5] sm:$0xff]  ;;  %s1515_s0 = smov 1   ;;  %s1516_s14 = smov 127  }
   0x5   :  { %1301 = vmatpush3.bf16.msra.mxu0 %v1298_v3  ;;  %v120_v19 = vld [vmem:[%s1899_s6] sm:$0xff]  ;;  %v122_v20 = vld [vmem:[%s1899_s6 + $0x10] sm:$0xff]  ;;  %v121_v26 = vld [vmem:[%s1899_s6 + $0x8] sm:$0xff]  ;;  %s1517_s23 = smov 104   ;;  %s1518_s24 = smov 80   ;;  %vm158_vm2 = vcmask 64512  }
   0x6   :  { %1303 = vmatprep.subr.bf16.mxu0 %v1302_v6  ;;  %v1597_v9 = vshrl.u32 %v34_v8, 7  ;;  %v1606_v17 = vand.u32 127, %v34_v8  ;;  %v123_v27 = vld [vmem:[%s1899_s6 + $0x18] sm:$0xff]  ;;  %s1519_s25 = smov 120   ;;  %s1520_s26 = smov 96   ;;  %vm161_vm3 = vcmask 130048   ;;  %vm1660_vm4 = vmpackc.low %vm158_vm2, %vm158_vm2 }
   0x7   :  { %s1521_s6 = smov 72   ;;  %s1522_s27 = smov 112   ;;  %vm429_vm11 = vcmask 523264  }
   0x8   :  { %v36_v10 = vsub.s32 1, %v1597_v9  ;;  %v126_v18 = vand.u32 1, %v1606_v17  ;;  %s1523_s28 = smov 88   ;;  %s1524_s29 = smov 64   ;;  %vm405_vm8 = vcmp.le.s32.totalorder %v1606_v17, %v1597_v9 }
   0x9   :  { %1305 = vmatpush3.bf16.msra.mxu0 %v1302_v6  ;;  %s1525_s30 = smov 56   ;;  %s1527_s15 = smov 16  }
   0xa   :  { %v37_v12 = vrot.slane %v1603_v11, %v36_v10  ;;  %vm127_vm1 = vcmp.eq.s32.totalorder %v126_v18, 0 }
   0xc   :  { %1183 = vmatmul.mubr.msk.f32.vlgmr.msra.gmra.mrb[0].mxu0 %vm1901_vm0, %v1593_v7 }
  0xdf   :  { %v1184_v13 = vpop.f32.mrb[0].mxu0 }
  0xe0   :  { %v111_v14 = vpop.f32.mrb[1].mxu0  ;;  %v117_v16 = vadd.f32 %v1184_v13, %v37_v12 }
  0xe1   :  { %v112_v15 = vadd.f32 %v111_v14, %v37_v12 }
  0xe2   :  { %v139_v32 = vmul.f32 %v121_v26, %v117_v16 }
  0xe3   :  { %132 = vrot.lane.b32.xlu1 %v112_v15, %s1515_s0  ;;  %128 = vrot.lane.b32.xlu0 %v112_v15, %s1516_s14  ;;  %v138_v24 = vmul.f32 %v120_v19, %v112_v15 }
  0xe7   :  { %134 = vrot.lane.b32.xlu1 %v117_v16, %s1515_s0  ;;  %130 = vrot.lane.b32.xlu0 %v117_v16, %s1516_s14  ;;  %s1526_s14 = smov 8  }
 0x155   :  { %v133_v21 = vpop.permute.xlu1 %132  ;;  %v129_v22 = vpop.permute.xlu0 %128 }
 0x156   :  { %v136_v23 = vsel %vm127_vm1, %v129_v22, %v133_v21 }
 0x157   :  { %v140_v25 = vmul.f32 %v136_v23, %v122_v20 }
 0x159   :  { %v142_v28 = vadd.f32 %v140_v25, %v138_v24  ;;  %v135_v29 = vpop.permute.xlu1 %134  ;;  %v131_v30 = vpop.permute.xlu0 %130 }
 0x15a   :  { %v137_v31 = vsel %vm127_vm1, %v131_v30, %v135_v29 }
 0x15b   :  { %v141_v33 = vmul.f32 %v137_v31, %v123_v27  ;;  %146 = vrot.lane.b32.xlu0 %v142_v28, %s1517_s23  ;;  %v381_v31 = vadd.s32 8, %v1597_v9 }
 0x15d   :  { %v143_v34 = vadd.f32 %v141_v33, %v139_v32  ;;  %v389_v32 = vshra.s32 %v381_v31, 3  ;;  %v396_v33 = vshra.s32 %v1606_v17, 3  ;;  %vm406_vm6 = vcmp.le.s32.totalorder %v1606_v17, %v381_v31 }
 0x15f   :  { %148 = vrot.lane.b32.xlu1 %v143_v34, %s1517_s23  ;;  %152 = vrot.lane.b32.xlu0 %v142_v28, %s1518_s24  ;;  %vm398_vm5 = vcmp.eq.s32.totalorder %v389_v32, %v396_v33 }
 0x160   :  { %vm414_vm9 = vmand %vm398_vm5, %vm406_vm6 }
 0x163   :  { %154 = vrot.lane.b32.xlu1 %v143_v34, %s1518_s24  ;;  %164 = vrot.lane.b32.xlu0 %v142_v28, %s1519_s25 }
 0x167   :  { %166 = vrot.lane.b32.xlu1 %v143_v34, %s1519_s25  ;;  %170 = vrot.lane.b32.xlu0 %v142_v28, %s1520_s26 }
 0x16b   :  { %172 = vrot.lane.b32.xlu1 %v143_v34, %s1520_s26  ;;  %176 = vrot.lane.b32.xlu0 %v142_v28, %s1521_s6 }
 0x16f   :  { %178 = vrot.lane.b32.xlu1 %v143_v34, %s1521_s6  ;;  %186 = vrot.lane.b32.xlu0 %v142_v28, %s1522_s27 }
 0x173   :  { %188 = vrot.lane.b32.xlu1 %v143_v34, %s1522_s27  ;;  %192 = vrot.lane.b32.xlu0 %v142_v28, %s1523_s28 }
 0x177   :  { %194 = vrot.lane.b32.xlu1 %v143_v34, %s1523_s28  ;;  %198 = vrot.lane.b32.xlu0 %v142_v28, %s1524_s29 }
 0x17b   :  { %200 = vrot.lane.b32.xlu1 %v143_v34, %s1524_s29  ;;  %208 = vrot.lane.b32.xlu0 %v142_v28, %s1525_s30  ;;  %s1529_s29 = smov [#allocation2]  }
 0x17f   :  { %210 = vrot.lane.b32.xlu1 %v143_v34, %s1525_s30  ;;  %s1065_s30 = sshll.u32 %s1529_s29, 4  ;;  %s1066_s30 = int_to_ptr.vmem [resolvable:$true] %s1065_s30 }
 0x180   :  { %p1496_p1 = scmp.lt.s32.totalorder %s1066_s30, %s1066_s30 }
 0x1cd   :  { %v147_v35 = vpop.permute.xlu0 %146 }
 0x1ce   :  { %v159_v36 = vsel %vm158_vm2, %v142_v28, %v147_v35 }
 0x1d1   :  { %v149_v37 = vpop.permute.xlu1 %148  ;;  %v153_v38 = vpop.permute.xlu0 %152 }
 0x1d2   :  { %v162_v39 = vsel %vm161_vm3, %v159_v36, %v153_v38  ;;  %v160_v40 = vsel %vm158_vm2, %v143_v34, %v149_v37  ;;  %v214_v3 = vsel %vm158_vm2, %v147_v35, %v153_v38  ;;  %v388_v34 = vshra.s32 %v1597_v9, 3 }
 0x1d3   :  { %1201 = vmatprep.mubr.msk.f32.mxu1 %vm158_vm2, %v162_v39  ;;  %v382_v35 = vadd.s32 16, %v1597_v9  ;;  %v383_v36 = vadd.s32 24, %v1597_v9  ;;  %v384_v38 = vadd.s32 32, %v1597_v9 }
 0x1d4   :  { %vm397_vm7 = vcmp.eq.s32.totalorder %v388_v34, %v396_v33 }
 0x1d5   :  { %v155_v41 = vpop.permute.xlu1 %154  ;;  %v165_v42 = vpop.permute.xlu0 %164  ;;  %vm413_vm10 = vmand %vm397_vm7, %vm405_vm8  ;;  %vm407_vm13 = vcmp.le.s32.totalorder %v1606_v17, %v382_v35  ;;  %vm408_vm15 = vcmp.le.s32.totalorder %v1606_v17, %v383_v36  ;;  %vm409_vm5 = vcmp.le.s32.totalorder %v1606_v17, %v384_v38 }
 0x1d6   :  { %v163_v43 = vsel %vm161_vm3, %v160_v40, %v155_v41  ;;  %v215_v4 = vsel %vm158_vm2, %v149_v37, %v155_v41  ;;  %v390_v37 = vshra.s32 %v382_v35, 3  ;;  %v385_v40 = vadd.s32 40, %v1597_v9 }
 0x1d7   :  { %v1630_v44 = vpack.i.bf16 %v163_v43, %v162_v39  ;;  %v391_v39 = vshra.s32 %v383_v36, 3 }
 0x1d8   :  { %vm399_vm12 = vcmp.eq.s32.totalorder %v390_v37, %v396_v33  ;;  %vm410_vm8 = vcmp.le.s32.totalorder %v1606_v17, %v385_v40 }
 0x1d9   :  { %v167_v45 = vpop.permute.xlu1 %166  ;;  %1411 = vrot.lane.b32.xlu0 %v1630_v44, %s1519_s25  ;;  %v171_v46 = vpop.permute.xlu0 %170  ;;  %vm400_vm14 = vcmp.eq.s32.totalorder %v391_v39, %v396_v33  ;;  %vm415_vm1 = vmand %vm399_vm12, %vm407_vm13 }
 0x1da   :  { %v182_v49 = vsel %vm158_vm2, %v165_v42, %v171_v46  ;;  %v392_v42 = vshra.s32 %v384_v38, 3  ;;  %vm416_vm6 = vmand %vm400_vm14, %vm408_vm15 }
 0x1dd   :  { %v173_v47 = vpop.permute.xlu1 %172  ;;  %v177_v48 = vpop.permute.xlu0 %176 }
 0x1de   :  { %v183_v50 = vsel %vm158_vm2, %v167_v45, %v173_v47  ;;  %v184_v53 = vsel %vm161_vm3, %v182_v49, %v177_v48  ;;  %v393_v49 = vshra.s32 %v385_v40, 3 }
 0x1e0   :  { %vm402_vm7 = vcmp.eq.s32.totalorder %v393_v49, %v396_v33 }
 0x1e1   :  { %v179_v51 = vpop.permute.xlu1 %178  ;;  %v187_v52 = vpop.permute.xlu0 %186  ;;  %vm418_vm13 = vmand %vm402_vm7, %vm410_vm8 }
 0x1e2   :  { %v185_v54 = vsel %vm161_vm3, %v183_v50, %v179_v51  ;;  %v387_v50 = vadd.s32 56, %v1597_v9 }
 0x1e3   :  { %v1638_v55 = vpack.i.bf16 %v185_v54, %v184_v53 }
 0x1e4   :  { %vm412_vm14 = vcmp.le.s32.totalorder %v1606_v17, %v387_v50 }
 0x1e5   :  { %v189_v56 = vpop.permute.xlu1 %188  ;;  %1416 = vrot.lane.b32.xlu1 %v1638_v55, %s1519_s25  ;;  %v193_v57 = vpop.permute.xlu0 %192 }
 0x1e6   :  { %v204_v60 = vsel %vm158_vm2, %v187_v52, %v193_v57  ;;  %v395_v57 = vshra.s32 %v387_v50, 3 }
 0x1e8   :  { %vm404_vm0 = vcmp.eq.s32.totalorder %v395_v57, %v396_v33 }
 0x1e9   :  { %v195_v58 = vpop.permute.xlu1 %194  ;;  %v199_v59 = vpop.permute.xlu0 %198 }
 0x1ea   :  { %v205_v61 = vsel %vm158_vm2, %v189_v56, %v195_v58  ;;  %v206_v63 = vsel %vm161_vm3, %v204_v60, %v199_v59 }
 0x1ed   :  { %v201_v62 = vpop.permute.xlu1 %200  ;;  %v209_v1 = vpop.permute.xlu0 %208 }
 0x1ee   :  { %v207_v0 = vsel %vm161_vm3, %v205_v61, %v201_v62  ;;  %v216_v8 = vsel %vm161_vm3, %v214_v3, %v209_v1 }
 0x1ef   :  { %v1646_v2 = vpack.i.bf16 %v207_v0, %v206_v63 }
 0x1f1   :  { %v211_v6 = vpop.permute.xlu1 %210  ;;  %1421 = vrot.lane.b32.xlu0 %v1646_v2, %s1519_s25 }
 0x1f2   :  { %v217_v10 = vsel %vm161_vm3, %v215_v4, %v211_v6 }
 0x1f3   :  { %v1654_v12 = vpack.i.bf16 %v217_v10, %v216_v8 }
 0x1f5   :  { %1426 = vrot.lane.b32.xlu1 %v1654_v12, %s1519_s25 }
 0x24b   :  { %v1412_v13 = vpop.permute.xlu0 %1411 }
 0x24c   :  { %v1414_v14 = vunpack.i.h.bf16 %v1412_v13  ;;  %v1413_v15 = vunpack.i.l.bf16 %v1412_v13 }
 0x24e   :  { %v1306_v18 = vpack.c.bf16 %v1414_v14, %v1413_v15 }
 0x250   :  { %1308 = vmatprep.subr.msk.bf16.mxu1 %vm1660_vm4, %v1306_v18 }
 0x251   :  { %1311 = vmatpush3.bf16.xpose.msk.msra.mxu1 %vm1660_vm4, %v1306_v18 }
 0x257   :  { %v1417_v19 = vpop.permute.xlu1 %1416 }
 0x258   :  { %v1419_v20 = vunpack.i.h.bf16 %v1417_v19  ;;  %v1418_v21 = vunpack.i.l.bf16 %v1417_v19 }
 0x25a   :  { %v1312_v22 = vpack.c.bf16 %v1419_v20, %v1418_v21 }
 0x25c   :  { %1314 = vmatprep.subr.msk.bf16.mxu1 %vm1660_vm4, %v1312_v22 }
 0x25d   :  { %1317 = vmatpush3.bf16.xpose.msk.msra.mxu1 %vm1660_vm4, %v1312_v22 }
 0x263   :  { %v1422_v23 = vpop.permute.xlu0 %1421 }
 0x264   :  { %v1424_v24 = vunpack.i.h.bf16 %v1422_v23  ;;  %v1423_v25 = vunpack.i.l.bf16 %v1422_v23 }
 0x266   :  { %v1318_v26 = vpack.c.bf16 %v1424_v24, %v1423_v25 }
 0x267   :  { %v1427_v27 = vpop.permute.xlu1 %1426 }
 0x268   :  { %v1429_v28 = vunpack.i.h.bf16 %v1427_v27  ;;  %v1428_v29 = vunpack.i.l.bf16 %v1427_v27  ;;  %1320 = vmatprep.subr.msk.bf16.mxu1 %vm1660_vm4, %v1318_v26 }
 0x269   :  { %1323 = vmatpush3.bf16.xpose.msk.msra.mxu1 %vm1660_vm4, %v1318_v26 }
 0x26a   :  { %v1324_v30 = vpack.c.bf16 %v1429_v28, %v1428_v29 }
 0x26c   :  { %1326 = vmatprep.subr.msk.bf16.mxu1 %vm1660_vm4, %v1324_v30 }
 0x271   :  { %1329 = vmatpush3.bf16.xpose.msk.msra.mxu1 %vm1660_vm4, %v1324_v30  ;;  %vm401_vm4 = vcmp.eq.s32.totalorder %v392_v42, %v396_v33 }
 0x278   :  { %1202 = vmatmul.mubr.msk.f32.vlgmr.msra.gmra.mrb[0].mxu1 %vm158_vm2, %v163_v43  ;;  %v386_v43 = vadd.s32 48, %v1597_v9 }
 0x279   :  { %1204 = vmatprep.mubr.msk.f32.mxu1 %vm158_vm2, %v184_v53 }
 0x27a   :  { %v394_v53 = vshra.s32 %v386_v43, 3  ;;  %vm411_vm12 = vcmp.le.s32.totalorder %v1606_v17, %v386_v43 }
 0x27c   :  { %1205 = vmatmul.mubr.msk.f32.gmra.mrb[2].mxu1 %vm158_vm2, %v185_v54 }
 0x27d   :  { %1207 = vmatprep.mubr.msk.f32.mxu1 %vm158_vm2, %v206_v63 }
 0x280   :  { %1208 = vmatmul.mubr.msk.f32.gmra.mrb[4].mxu1 %vm158_vm2, %v207_v0 }
 0x281   :  { %1210 = vmatprep.mubr.msk.f32.mxu1 %vm158_vm2, %v216_v8 }
 0x284   :  { %1211 = vmatmul.mubr.msk.f32.gmra.mrb[6].mxu1 %vm158_vm2, %v217_v10 }
 0x34b   :  { %v1203_v41 = vpop.f32.mrb[0].mxu1 }
 0x34c   :  { %v422_v45 = vsel %vm414_vm9, %v1203_v41, -1e+30  ;;  %v340_v46 = vpop.f32.mrb[1].mxu1  ;;  %vm417_vm9 = vmand %vm401_vm4, %vm409_vm5 }
 0x34d   :  { %v421_v47 = vsel %vm413_vm10, %v340_v46, -1e+30  ;;  %v433_v48 = vsel %vm429_vm11, %v422_v45, -inf  ;;  %vm403_vm10 = vcmp.eq.s32.totalorder %v394_v53, %v396_v33 }
 0x34e   :  { %434 = vmax.xlane.f32.xlu1 %v433_v48  ;;  %v430_v51 = vsel %vm429_vm11, %v421_v47, -inf  ;;  %vm419_vm15 = vmand %vm403_vm10, %vm411_vm12 }
 0x34f   :  { %431 = vmax.xlane.f32.xlu0 %v430_v51  ;;  %v1206_v52 = vpop.f32.mrb[2].mxu1 }
 0x350   :  { %v350_v54 = vpop.f32.mrb[3].mxu1  ;;  %v424_v59 = vsel %vm416_vm6, %v1206_v52, -1e+30 }
 0x351   :  { %v423_v56 = vsel %vm415_vm1, %v350_v54, -1e+30  ;;  %v439_v63 = vsel %vm429_vm11, %v424_v59, -inf  ;;  %vm420_vm1 = vmand %vm404_vm0, %vm412_vm14  ;;  %vm699_vm0 = vcmask 195584  }
 0x352   :  { %v436_v58 = vsel %vm429_vm11, %v423_v56, -inf }
 0x353   :  { %437 = vmax.xlane.f32.xlu0 %v436_v58  ;;  %v1209_v60 = vpop.f32.mrb[4].mxu1 }
 0x354   :  { %v360_v61 = vpop.f32.mrb[5].mxu1  ;;  %v426_v1 = vsel %vm418_vm13, %v1209_v60, -1e+30 }
 0x355   :  { %v425_v62 = vsel %vm417_vm9, %v360_v61, -1e+30  ;;  %v445_v8 = vsel %vm429_vm11, %v426_v1, -inf }
 0x356   :  { %v442_v0 = vsel %vm429_vm11, %v425_v62, -inf }
 0x357   :  { %440 = vmax.xlane.f32.xlu0 %v439_v63  ;;  %443 = vmax.xlane.f32.xlu1 %v442_v0  ;;  %v1212_v3 = vpop.f32.mrb[6].mxu1 }
 0x358   :  { %v370_v4 = vpop.f32.mrb[7].mxu1  ;;  %v428_v13 = vsel %vm420_vm1, %v1212_v3, -1e+30 }
 0x359   :  { %v427_v6 = vsel %vm419_vm15, %v370_v4, -1e+30  ;;  %v451_v17 = vsel %vm429_vm11, %v428_v13, -inf }
 0x35a   :  { %v448_v10 = vsel %vm429_vm11, %v427_v6, -inf }
 0x35b   :  { %446 = vmax.xlane.f32.xlu0 %v445_v8  ;;  %449 = vmax.xlane.f32.xlu1 %v448_v10 }
 0x35f   :  { %452 = vmax.xlane.f32.xlu0 %v451_v17 }
 0x36c   :  { %1431 = vrot.lane.b32.xlu1 %v1630_v44, %s1522_s27 }
 0x3db   :  { %v435_v14 = vpop.xlane.xlu1 %434 }
 0x3dc   :  { %v455_v15 = vsub.f32 %v422_v45, %v435_v14  ;;  %v432_v16 = vpop.xlane.xlu0 %431 }
 0x3dd   :  { %v454_v18 = vsub.f32 %v421_v47, %v432_v16 }
 0x3de   :  { %v464_v19 = vmul.f32 1.442695, %v455_v15 }
 0x3df   :  { %v462_v20 = vmul.f32 1.442695, %v454_v18 }
 0x3e0   :  { %1450 = vpow2.f32 %v464_v19  ;;  %v438_v21 = vpop.xlane.xlu0 %437 }
 0x3e1   :  { %1452 = vpow2.f32 %v462_v20  ;;  %v456_v22 = vsub.f32 %v423_v56, %v438_v21 }
 0x3e3   :  { %v466_v23 = vmul.f32 1.442695, %v456_v22 }
 0x3e4   :  { %v441_v24 = vpop.xlane.xlu0 %440  ;;  %v444_v25 = vpop.xlane.xlu1 %443 }
 0x3e5   :  { %1454 = vpow2.f32 %v466_v23  ;;  %v457_v26 = vsub.f32 %v424_v59, %v441_v24  ;;  %v458_v27 = vsub.f32 %v425_v62, %v444_v25 }
 0x3e7   :  { %v468_v28 = vmul.f32 1.442695, %v457_v26  ;;  %v470_v29 = vmul.f32 1.442695, %v458_v27 }
 0x3e8   :  { %v447_v30 = vpop.xlane.xlu0 %446  ;;  %v450_v44 = vpop.xlane.xlu1 %449 }
 0x3e9   :  { %1456 = vpow2.f32 %v468_v28  ;;  %v459_v31 = vsub.f32 %v426_v1, %v447_v30  ;;  %v460_v35 = vsub.f32 %v427_v6, %v450_v44 }
 0x3ea   :  { %v1715_v32 = vpop.eup %1450  ;;  %1458 = vpow2.f32 %v470_v29 }
 0x3eb   :  { %v1453_v33 = vpop.eup %1452  ;;  %v472_v34 = vmul.f32 1.442695, %v459_v31  ;;  %v481_v36 = vsel %vm429_vm11, %v1715_v32, 0.0  ;;  %v474_v45 = vmul.f32 1.442695, %v460_v35  ;;  %v703_v35 = vld [vmem:[%s1895_s2 + $0x8] sm:$0xff] }
 0x3ec   :  { %482 = vadd.xlane.f32.xlu0 %v481_v36  ;;  %v453_v37 = vpop.xlane.xlu0 %452  ;;  %v1432_v38 = vpop.permute.xlu1 %1431  ;;  %v478_v39 = vsel %vm429_vm11, %v1453_v33, 0.0 }
 0x3ed   :  { %1460 = vpow2.f32 %v472_v34  ;;  %v461_v40 = vsub.f32 %v428_v13, %v453_v37  ;;  %v1434_v41 = vunpack.i.h.bf16 %v1432_v38  ;;  %v1433_v42 = vunpack.i.l.bf16 %v1432_v38  ;;  %479 = vadd.xlane.f32.xlu1 %v478_v39  ;;  %v702_v34 = vld [vmem:[%s1895_s2] sm:$0xff]  ;;  %v704_v37 = vld [vmem:[%s1895_s2 + $0x10] sm:$0xff]  ;;  %v705_v38 = vld [vmem:[%s1895_s2 + $0x18] sm:$0xff]  ;;  %s1528_s2 = smov 24  }
 0x3ee   :  { %v1346_v36 = vpack.c.bf16 %v703_v35, %v702_v34  ;;  %v1350_v39 = vpack.c.bf16 %v705_v38, %v704_v37  ;;  %v930_v34 = vld [vmem:[%s1897_s4 + $0x38] sm:$0xff]  ;;  %v932_v37 = vld [vmem:[%s1897_s4 + $0x48] sm:$0xff] }
 0x3ef   :  { %v1720_v43 = vpop.eup %1454  ;;  %v476_v46 = vmul.f32 1.442695, %v461_v40  ;;  %v1330_v47 = vpack.c.bf16 %v1434_v41, %v1433_v42 }
 0x3f0   :  { %v484_v48 = vsel %vm429_vm11, %v1720_v43, 0.0 }
 0x3f1   :  { %1462 = vpow2.f32 %v476_v46  ;;  %485 = vadd.xlane.f32.xlu1 %v484_v48  ;;  %1331 = vmatprep.subr.bf16.mxu0 %v1330_v47 }
 0x3f2   :  { %1333 = vmatpush3.bf16.msra.mxu0 %v1330_v47  ;;  %1464 = vpow2.f32 %v474_v45 }
 0x3f3   :  { %v1724_v49 = vpop.eup %1456 }
 0x3f4   :  { %v1726_v50 = vpop.eup %1458  ;;  %v487_v51 = vsel %vm429_vm11, %v1724_v49, 0.0 }
 0x3f5   :  { %488 = vadd.xlane.f32.xlu0 %v487_v51  ;;  %v490_v52 = vsel %vm429_vm11, %v1726_v50, 0.0 }
 0x3f6   :  { %491 = vadd.xlane.f32.xlu1 %v490_v52 }
 0x3f7   :  { %v1732_v53 = vpop.eup %1460 }
 0x3f8   :  { %v493_v54 = vsel %vm429_vm11, %v1732_v53, 0.0 }
 0x3f9   :  { %494 = vadd.xlane.f32.xlu0 %v493_v54 }
 0x3fb   :  { %v1736_v56 = vpop.eup %1462 }
 0x3fc   :  { %v499_v57 = vsel %vm429_vm11, %v1736_v56, 0.0  ;;  %v1465_v58 = vpop.eup %1464 }
 0x3fd   :  { %500 = vadd.xlane.f32.xlu0 %v499_v57  ;;  %v496_v59 = vsel %vm429_vm11, %v1465_v58, 0.0 }
 0x401   :  { %497 = vadd.xlane.f32.xlu0 %v496_v59 }
 0x407   :  { %1441 = vrot.lane.b32.xlu1 %v1646_v2, %s1522_s27 }
 0x40b   :  { %1446 = vrot.lane.b32.xlu1 %v1654_v12, %s1522_s27 }
 0x417   :  { %1436 = vrot.lane.b32.xlu0 %v1638_v55, %s1522_s27 }
 0x479   :  { %v483_v61 = vpop.xlane.xlu0 %482 }
 0x47a   :  { %v480_v60 = vpop.xlane.xlu1 %479 }
 0x47b   :  { %1466 = vrcp.f32 %v480_v60 }
 0x47c   :  { %1468 = vrcp.f32 %v483_v61 }
 0x47e   :  { %v486_v62 = vpop.xlane.xlu1 %485 }
 0x47f   :  { %1470 = vrcp.f32 %v486_v62  ;;  %v708_v62 = vsub.s32 2, %v1597_v9 }
 0x482   :  { %v489_v63 = vpop.xlane.xlu0 %488 }
 0x483   :  { %v492_v4 = vpop.xlane.xlu1 %491  ;;  %1472 = vrcp.f32 %v489_v63  ;;  %v709_v63 = vrot.slane %v1603_v11, %v708_v62 }
 0x484   :  { %1474 = vrcp.f32 %v492_v4 }
 0x485   :  { %v1467_v0 = vpop.eup %1466 }
 0x486   :  { %v495_v1 = vpop.xlane.xlu0 %494  ;;  %v503_v3 = vmul.f32 %v1467_v0, %v1453_v33  ;;  %v1469_v21 = vpop.eup %1468 }
 0x487   :  { %v1442_v8 = vpop.permute.xlu1 %1441  ;;  %1476 = vrcp.f32 %v495_v1  ;;  %v505_v23 = vmul.f32 %v1469_v21, %v1715_v32 }
 0x488   :  { %1229 = vmatprep.mubr.msk.f32.mxu0 %vm429_vm11, %v503_v3  ;;  %v1444_v13 = vunpack.i.h.bf16 %v1442_v8  ;;  %v1443_v12 = vunpack.i.l.bf16 %v1442_v8 }
 0x489   :  { %v1471_v22 = vpop.eup %1470 }
 0x48a   :  { %v501_v6 = vpop.xlane.xlu0 %500  ;;  %v1338_v16 = vpack.c.bf16 %v1444_v13, %v1443_v12  ;;  %v507_v25 = vmul.f32 %v1471_v22, %v1720_v43  ;;  %v834_v22 = vld [vmem:[%s1896_s3 + $0x10] sm:$0xff] }
 0x48b   :  { %v1447_v55 = vpop.permute.xlu1 %1446 }
 0x48c   :  { %v1449_v18 = vunpack.i.h.bf16 %v1447_v55  ;;  %v1448_v19 = vunpack.i.l.bf16 %v1447_v55 }
 0x48d   :  { %v1473_v24 = vpop.eup %1472 }
 0x48e   :  { %v498_v2 = vpop.xlane.xlu0 %497  ;;  %v1342_v20 = vpack.c.bf16 %v1449_v18, %v1448_v19  ;;  %v1475_v26 = vpop.eup %1474  ;;  %v509_v27 = vmul.f32 %v1473_v24, %v1724_v49  ;;  %v832_v19 = vld [vmem:[%s1896_s3] sm:$0xff] }
 0x48f   :  { %1478 = vrcp.f32 %v498_v2  ;;  %v511_v29 = vmul.f32 %v1475_v26, %v1726_v50  ;;  %v924_v26 = vld [vmem:[%s1897_s4 + $0x8] sm:$0xff] }
 0x490   :  { %1480 = vrcp.f32 %v501_v6 }
 0x491   :  { %v1477_v28 = vpop.eup %1476 }
 0x492   :  { %v1437_v10 = vpop.permute.xlu0 %1436  ;;  %v513_v44 = vmul.f32 %v1477_v28, %v1732_v53 }
 0x493   :  { %v1439_v17 = vunpack.i.h.bf16 %v1437_v10  ;;  %v1438_v14 = vunpack.i.l.bf16 %v1437_v10 }
 0x495   :  { %v1334_v15 = vpack.c.bf16 %v1439_v17, %v1438_v14 }
 0x497   :  { %1335 = vmatprep.subr.bf16.mxu0 %v1334_v15 }
 0x498   :  { %1337 = vmatpush3.bf16.msra.mxu0 %v1334_v15 }
 0x499   :  { %1339 = vmatprep.subr.bf16.mxu0 %v1338_v16  ;;  %v1479_v30 = vpop.eup %1478 }
 0x49a   :  { %v1481_v31 = vpop.eup %1480  ;;  %v515_v32 = vmul.f32 %v1479_v30, %v1465_v58 }
 0x49b   :  { %v517_v33 = vmul.f32 %v1481_v31, %v1736_v56  ;;  %v928_v31 = vld [vmem:[%s1897_s4 + $0x28] sm:$0xff] }
 0x49c   :  { %1341 = vmatpush3.bf16.msra.mxu0 %v1338_v16 }
 0x49d   :  { %1343 = vmatprep.subr.bf16.mxu0 %v1342_v20 }
 0x4a0   :  { %1345 = vmatpush3.bf16.msra.mxu0 %v1342_v20  ;;  %v833_v20 = vld [vmem:[%s1896_s3 + $0x8] sm:$0xff] }
 0x4a1   :  { %1347 = vmatprep.subr.bf16.mxu0 %v1346_v36  ;;  %v1354_v21 = vpack.c.bf16 %v833_v20, %v832_v19 }
 0x4a3   :  { %1230 = vmatmul.mubr.msk.f32.vlgmr.msra.gmra.mrb[2].mxu0 %vm429_vm11, %v505_v23  ;;  %v835_v23 = vld [vmem:[%s1896_s3 + $0x18] sm:$0xff]  ;;  %s1491_s3 = scalar_lea.vmem %s1066_s30, 256 }
 0x4a4   :  { %1232 = vmatprep.mubr.msk.f32.mxu0 %vm429_vm11, %v507_v25  ;;  %1349 = vmatpush3.bf16.msra.mxu0 %v1346_v36  ;;  %v1358_v24 = vpack.c.bf16 %v835_v23, %v834_v22  ;;  %v923_v25 = vld [vmem:[%s1897_s4] sm:$0xff]  ;;  %p1492_p0 = scmp.ne.s32.totalorder %s1066_s30, %s1491_s3  ;;  %p1497_p2 = scmp.lt.s32.totalorder %s1491_s3, %s1491_s3 }
 0x4a5   :  { %1351 = vmatprep.subr.bf16.mxu0 %v1350_v39  ;;  %v1362_v28 = vpack.c.bf16 %v924_v26, %v923_v25  ;;  %v931_v36 = vld [vmem:[%s1897_s4 + $0x40] sm:$0xff] }
 0x4a6   :  { %v1378_v38 = vpack.c.bf16 %v932_v37, %v931_v36  ;;  %v1048_v37 = vsub.s32 6, %v1597_v9  ;;  %p1498_p3 = por %p1497_p2, %p1496_p1 }
 0x4a7   :  { %1233 = vmatmul.mubr.msk.f32.gmra.mrb[4].mxu0 %vm429_vm11, %v509_v27  ;;  %v925_v27 = vld [vmem:[%s1897_s4 + $0x10] sm:$0xff]  ;;  %1363 = vmatprep.subr.bf16.mxu1 %v1362_v28 }
 0x4a8   :  { %1235 = vmatprep.mubr.msk.f32.mxu0 %vm429_vm11, %v511_v29  ;;  %1353 = vmatpush3.bf16.msra.mxu0 %v1350_v39  ;;  %v926_v29 = vld [vmem:[%s1897_s4 + $0x18] sm:$0xff]  ;;  %v933_v39 = vld [vmem:[%s1897_s4 + $0x50] sm:$0xff]  ;;  %p1499_p4 = pnand %p1498_p3, %p1492_p0 }
 0x4a9   :  { %1355 = vmatprep.subr.bf16.mxu0 %v1354_v21  ;;  %v1366_v30 = vpack.c.bf16 %v926_v29, %v925_v27  ;;  %1365 = vmatpush3.bf16.msra.mxu1 %v1362_v28 }
 0x4ab   :  { %1236 = vmatmul.mubr.msk.f32.gmra.mrb[6].mxu0 %vm429_vm11, %v513_v44  ;;  %v927_v44 = vld [vmem:[%s1897_s4 + $0x20] sm:$0xff]  ;;  %1367 = vmatprep.subr.bf16.mxu1 %v1366_v30 }
 0x4ac   :  { %1238 = vmatprep.mubr.msk.f32.mxu0 %vm429_vm11, %v515_v32  ;;  %v1370_v32 = vpack.c.bf16 %v928_v31, %v927_v44 }
 0x4ad   :  { %1369 = vmatpush3.bf16.msra.mxu1 %v1366_v30 }
 0x4ae   :  { %1371 = vmatprep.subr.bf16.mxu1 %v1370_v32 }
 0x4af   :  { %1239 = vmatmul.mubr.msk.f32.gmra.mrb[8].mxu0 %vm429_vm11, %v517_v33  ;;  %vm1904_vm11 = vcmask 261120   ;;  %v929_v33 = vld [vmem:[%s1897_s4 + $0x30] sm:$0xff] }
 0x4b0   :  { %vm1905_vm4 = vmmov %vm1904_vm11  ;;  %v1374_v35 = vpack.c.bf16 %v930_v34, %v929_v33 }
 0x4b1   :  { %1373 = vmatpush3.bf16.msra.mxu1 %v1370_v32 }
 0x4b2   :  { %1375 = vmatprep.subr.bf16.mxu1 %v1374_v35 }
 0x4b5   :  { %1377 = vmatpush3.bf16.msra.mxu1 %v1374_v35 }
 0x4b6   :  { %1379 = vmatprep.subr.bf16.mxu1 %v1378_v38 }
 0x4b9   :  { %1381 = vmatpush3.bf16.msra.mxu1 %v1378_v38  ;;  %v1054_v38 = vsub.s32 7, %v1597_v9 }
 0x576   :  { %v1231_v40 = vpop.f32.mrb[2].mxu0 }
 0x577   :  { %v632_v41 = vpop.f32.mrb[3].mxu0 }
 0x57a   :  { %v1234_v42 = vpop.f32.mrb[4].mxu0 }
 0x57b   :  { %675 = vrot.lane.b32.xlu1 %v1234_v42, %s1526_s14  ;;  %v642_v43 = vpop.f32.mrb[5].mxu0  ;;  %v935_v42 = vld [vmem:[%s1897_s4 + $0x60] sm:$0xff] }
 0x57e   :  { %v1237_v45 = vpop.f32.mrb[6].mxu0 }
 0x57f   :  { %673 = vrot.lane.b32.xlu1 %v642_v43, %s1526_s14  ;;  %v652_v46 = vpop.f32.mrb[7].mxu0  ;;  %v936_v43 = vld [vmem:[%s1897_s4 + $0x68] sm:$0xff] }
 0x580   :  { %681 = vrot.lane.b32.xlu0 %v652_v46, %s1527_s15 }
 0x582   :  { %v1240_v47 = vpop.f32.mrb[8].mxu0 }
 0x583   :  { %683 = vrot.lane.b32.xlu1 %v1237_v45, %s1527_s15  ;;  %v662_v48 = vpop.f32.mrb[9].mxu0  ;;  %v1386_v45 = vpack.c.bf16 %v936_v43, %v935_v42 }
 0x584   :  { %689 = vrot.lane.b32.xlu0 %v662_v48, %s1528_s2 }
 0x587   :  { %691 = vrot.lane.b32.xlu1 %v1240_v47, %s1528_s2 }
 0x5ed   :  { %v676_v49 = vpop.permute.xlu1 %675 }
 0x5ee   :  { %v696_v58 = vsel %vm158_vm2, %v1231_v40, %v676_v49  ;;  %v934_v40 = vld [vmem:[%s1897_s4 + $0x58] sm:$0xff] }
 0x5f1   :  { %v674_v50 = vpop.permute.xlu1 %673 }
 0x5f2   :  { %v682_v51 = vpop.permute.xlu0 %681  ;;  %v695_v52 = vsel %vm158_vm2, %v632_v41, %v674_v50  ;;  %vm1906_vm2 = vmmov %vm1905_vm4  ;;  %v1382_v41 = vpack.c.bf16 %v934_v40, %v933_v39  ;;  %v1490_v39 = vld [vmem:[%s1898_s5] sm:$0xff] }
 0x5f3   :  { %v697_v54 = vsel %vm161_vm3, %v695_v52, %v682_v51  ;;  %vm1908_vm5 = vmmov %vm1906_vm2  ;;  %v822_v52 = vsub.s32 4, %v1597_v9  ;;  %v1049_v40 = vrot.slane %v1490_v39, %v1048_v37 }
 0x5f4   :  { %vm1909_vm6 = vmmov %vm1906_vm2  ;;  %1383 = vmatprep.subr.bf16.mxu1 %v1382_v41 }
 0x5f5   :  { %v684_v53 = vpop.permute.xlu1 %683  ;;  %1385 = vmatpush3.bf16.msra.mxu1 %v1382_v41  ;;  %vm1910_vm7 = vmmov %vm1906_vm2 }
 0x5f6   :  { %v690_v56 = vpop.permute.xlu0 %689  ;;  %v698_v59 = vsel %vm161_vm3, %v696_v58, %v684_v53  ;;  %vm1907_vm3 = vmmov %vm1906_vm2  ;;  %1387 = vmatprep.subr.bf16.mxu1 %v1386_v45  ;;  %v828_v53 = vsub.s32 5, %v1597_v9 }
 0x5f7   :  { %v700_v57 = vsel %vm699_vm0, %v697_v54, %v690_v56  ;;  %v823_v54 = vrot.slane %v1603_v11, %v822_v52  ;;  %vm1911_vm8 = vmmov %vm1906_vm2 }
 0x5f8   :  { %1249 = vmatprep.mubr.msk.f32.mxu0 %vm1904_vm11, %v700_v57  ;;  %v829_v58 = vrot.slane %v1603_v11, %v828_v53  ;;  %vm1912_vm9 = vmmov %vm1906_vm2 }
 0x5f9   :  { %v692_v60 = vpop.permute.xlu1 %691  ;;  %1389 = vmatpush3.bf16.msra.mxu1 %v1386_v45  ;;  %vm1913_vm10 = vmmov %vm1906_vm2  ;;  %v1055_v45 = vrot.slane %v1490_v39, %v1054_v38 }
 0x5fa   :  { %v701_v61 = vsel %vm699_vm0, %v698_v59, %v692_v60  ;;  %vm1914_vm12 = vmmov %vm1906_vm2 }
 0x5fb   :  { %1250 = vmatmul.mubr.msk.f32.vlgmr.msra.gmra.mrb[10].mxu0 %vm1905_vm4, %v701_v61  ;;  %vm1915_vm13 = vmmov %vm1906_vm2 }
 0x5fc   :  { %1357 = vmatpush3.bf16.msra.mxu0 %v1354_v21  ;;  %vm1916_vm14 = vmmov %vm1906_vm2 }
 0x5fd   :  { %1359 = vmatprep.subr.bf16.mxu0 %v1358_v24  ;;  %vm1917_vm15 = vmmov %vm1906_vm2 }
 0x600   :  { %1361 = vmatpush3.bf16.msra.mxu0 %v1358_v24 }
 0x6ce   :  { %v1251_v0 = vpop.f32.mrb[10].mxu0 }
 0x6cf   :  { %v788_v1 = vadd.f32 %v1251_v0, %v709_v63  ;;  %v782_v3 = vpop.f32.mrb[11].mxu0 }
 0x6d0   :  { %v783_v4 = vadd.f32 %v782_v3, %v709_v63  ;;  %v938_v3 = vld [vmem:[%s1897_s4 + $0x78] sm:$0xff] }
 0x6d1   :  { %v792_v6 = vadd.f32 %v788_v1, %v1593_v7  ;;  %v937_v1 = vld [vmem:[%s1897_s4 + $0x70] sm:$0xff] }
 0x6d2   :  { %v791_v8 = vadd.f32 %v783_v4, %v1586_v5  ;;  %v1390_v4 = vpack.c.bf16 %v938_v3, %v937_v1 }
 0x6d3   :  { %v796_v2 = vsel %vm1906_vm2, %v792_v6, 0.0 }
 0x6d4   :  { %797 = vadd.xlane.f32.xlu1 %v796_v2  ;;  %v793_v10 = vsel %vm1907_vm3, %v791_v8, 0.0  ;;  %1391 = vmatprep.subr.bf16.mxu1 %v1390_v4 }
 0x6d5   :  { %794 = vadd.xlane.f32.xlu0 %v793_v10  ;;  %1393 = vmatpush3.bf16.msra.mxu1 %v1390_v4 }
 0x761   :  { %v798_v13 = vpop.xlane.xlu1 %797 }
 0x762   :  { %v801_v12 = vmul.f32 0.03125, %v798_v13  ;;  %v795_v17 = vpop.xlane.xlu0 %794 }
 0x763   :  { %v800_v14 = vmul.f32 0.03125, %v795_v17 }
 0x764   :  { %v1787_v55 = vsub.f32 %v792_v6, %v801_v12  ;;  %v838_v6 = vsub.s32 0, %v1597_v9 }
 0x765   :  { %v1789_v15 = vsub.f32 %v791_v8, %v800_v14 }
 0x766   :  { %v805_v5 = vmul.f32 %v1787_v55, %v1787_v55  ;;  %v839_v8 = vrot.slane %v1603_v11, %v838_v6 }
 0x767   :  { %v804_v16 = vmul.f32 %v1789_v15, %v1789_v15 }
 0x768   :  { %v809_v18 = vsel %vm1909_vm6, %v805_v5, 0.0 }
 0x769   :  { %v806_v7 = vsel %vm1908_vm5, %v804_v16, 0.0 }
 0x76a   :  { %807 = vadd.xlane.f32.xlu0 %v806_v7 }
 0x76e   :  { %810 = vadd.xlane.f32.xlu0 %v809_v18 }
 0x7f7   :  { %v808_v46 = vpop.xlane.xlu0 %807 }
 0x7f8   :  { %v812_v47 = vmul.f32 0.03125, %v808_v46 }
 0x7fa   :  { %v814_v48 = vadd.f32 1e-05, %v812_v47 }
 0x7fb   :  { %v811_v49 = vpop.xlane.xlu0 %810 }
 0x7fc   :  { %1482 = vrsqrt.f32 %v814_v48  ;;  %v813_v50 = vmul.f32 0.03125, %v811_v49 }
 0x7fe   :  { %v815_v51 = vadd.f32 1e-05, %v813_v50 }
 0x800   :  { %1484 = vrsqrt.f32 %v815_v51 }
 0x806   :  { %v1483_v56 = vpop.eup %1482 }
 0x807   :  { %v818_v57 = vmul.f32 %v1483_v56, %v1789_v15 }
 0x809   :  { %v824_v59 = vmul.f32 %v823_v54, %v818_v57 }
 0x80a   :  { %v1485_v60 = vpop.eup %1484 }
 0x80b   :  { %v819_v61 = vmul.f32 %v1485_v60, %v1787_v55  ;;  %v830_v62 = vadd.f32 %v829_v58, %v824_v59  ;;  %v941_v55 = vsub.s32 3, %v1597_v9 }
 0x80d   :  { %v825_v63 = vmul.f32 %v823_v54, %v819_v61  ;;  %1260 = vmatprep.mubr.msk.f32.mxu0 %vm1910_vm7, %v830_v62  ;;  %v942_v15 = vrot.slane %v1603_v11, %v941_v55 }
 0x80f   :  { %v831_v0 = vadd.f32 %v829_v58, %v825_v63 }
 0x811   :  { %1261 = vmatmul.mubr.msk.f32.vlgmr.msra.gmra.mrb[12].mxu0 %vm1911_vm8, %v831_v0 }
 0x8e4   :  { %v1262_v2 = vpop.f32.mrb[12].mxu0 }
 0x8e5   :  { %v918_v10 = vadd.f32 %v1262_v2, %v839_v8  ;;  %v912_v13 = vpop.f32.mrb[13].mxu0 }
 0x8e6   :  { %v913_v12 = vadd.f32 %v912_v13, %v839_v8 }
 0x8e7   :  { %v922_v14 = vmax.f32 %v918_v10, 0.0 }
 0x8e8   :  { %v921_v17 = vmax.f32 %v913_v12, 0.0 }
 0x8ea   :  { %1295 = vmatprep.mubr.f32.mxu1 %v921_v17 }
 0x8eb   :  { %1296 = vmatmul.mubr.f32.vlgmr.msra.gmra.mrb[8].mxu1 %v922_v14 }
 0x9be   :  { %v1297_v16 = vpop.f32.mrb[8].mxu1 }
 0x9bf   :  { %v1015_v7 = vadd.f32 %v1297_v16, %v942_v15  ;;  %v1009_v5 = vpop.f32.mrb[9].mxu1 }
 0x9c0   :  { %v1010_v18 = vadd.f32 %v1009_v5, %v942_v15 }
 0x9c1   :  { %v1019_v19 = vadd.f32 %v1015_v7, %v831_v0 }
 0x9c2   :  { %v1018_v20 = vadd.f32 %v1010_v18, %v830_v62 }
 0x9c3   :  { %v1023_v21 = vsel %vm1912_vm9, %v1019_v19, 0.0 }
 0x9c4   :  { %1024 = vadd.xlane.f32.xlu0 %v1023_v21  ;;  %v1020_v22 = vsel %vm1913_vm10, %v1018_v20, 0.0 }
 0x9c5   :  { %1021 = vadd.xlane.f32.xlu1 %v1020_v22 }
 0xa51   :  { %v1025_v23 = vpop.xlane.xlu0 %1024 }
 0xa52   :  { %v1027_v24 = vmul.f32 0.03125, %v1025_v23  ;;  %v1022_v25 = vpop.xlane.xlu1 %1021 }
 0xa53   :  { %v1026_v26 = vmul.f32 0.03125, %v1022_v25 }
 0xa54   :  { %v1029_v27 = vsub.f32 %v1019_v19, %v1027_v24 }
 0xa55   :  { %v1028_v28 = vsub.f32 %v1018_v20, %v1026_v26 }
 0xa56   :  { %v1031_v29 = vmul.f32 %v1029_v27, %v1029_v27 }
 0xa57   :  { %v1030_v11 = vmul.f32 %v1028_v28, %v1028_v28 }
 0xa58   :  { %v1035_v30 = vsel %vm1914_vm12, %v1031_v29, 0.0 }
 0xa59   :  { %1036 = vadd.xlane.f32.xlu0 %v1035_v30  ;;  %v1032_v44 = vsel %vm1915_vm13, %v1030_v11, 0.0 }
 0xa5a   :  { %1033 = vadd.xlane.f32.xlu1 %v1032_v44 }
 0xae6   :  { %v1037_v31 = vpop.xlane.xlu0 %1036 }
 0xae7   :  { %v1039_v32 = vmul.f32 0.03125, %v1037_v31  ;;  %v1034_v33 = vpop.xlane.xlu1 %1033 }
 0xae8   :  { %v1038_v34 = vmul.f32 0.03125, %v1034_v33 }
 0xae9   :  { %v1041_v35 = vadd.f32 1e-05, %v1039_v32 }
 0xaea   :  { %v1040_v36 = vadd.f32 1e-05, %v1038_v34 }
 0xaeb   :  { %1486 = vrsqrt.f32 %v1041_v35 }
 0xaec   :  { %1488 = vrsqrt.f32 %v1040_v36 }
 0xaf5   :  { %v1487_v41 = vpop.eup %1486 }
 0xaf6   :  { %v1489_v42 = vpop.eup %1488  ;;  %v1045_v43 = vmul.f32 %v1487_v41, %v1029_v27 }
 0xaf7   :  { %v1044_v46 = vmul.f32 %v1489_v42, %v1028_v28 }
 0xaf8   :  { %v1051_v47 = vmul.f32 %v1049_v40, %v1045_v43 }
 0xaf9   :  { %v1050_v48 = vmul.f32 %v1049_v40, %v1044_v46 }
 0xafa   :  { %v1057_v49 = vadd.f32 %v1055_v45, %v1051_v47 }
 0xafb   :  { %v1056_v50 = vadd.f32 %v1055_v45, %v1050_v48 }
 0xafc   :  { %1059 = vst.msk [vmem:[#allocation2 + $0x8] sm:$0xff] %vm1916_vm14, %v1057_v49 }
 0xafd   :  { %1058 = vst.msk [vmem:[#allocation2] sm:$0xff] %vm1917_vm15, %v1056_v50 }
 0xafe   :  { %1502 = shalt.err (!%p1499_p4)
}
 0xaff   :  { %s1503_s9 = scalar_lea.hbm %s1900_s7, 256 }
 0xb00   :  { %p1504_p5 = scmp.ne.s32.totalorder %s1900_s7, %s1503_s9  ;;  %p1507_p6 = scmp.lt.u32.totalorder %s1503_s9, %s1900_s7 }
 0xb02   :  { %p1509_p7 = pnand %p1507_p6, %p1504_p5 }
 0xb04   :  { %1512 = shalt.err (!%p1509_p7)
}
 0xb05   :  { %s1530_s13 = smov 128  }
 0xb06   :  { %1071 = dma.vmem_to_hbm [thread:$0]  %s1066_s30, 256, %s1900_s7, [#allocation3], %s1530_s13, %s1530_s13, %s1526_s14  }
 0xb07   :  { %1513 = dma.done.wait [#allocation3], 256  }
 0xb08   :  { %1514 = vsyncadd [#allocation3], 4294967040 }
 0xb09   :  { %1075 = vsyncpa [#allocation3], 1 }

</bundles_post_ra>
